<compile_context>
chip_gen: v7x
topology: tpu7x:2x2x1
jax: 0.10.0
libtpu: 0.0.40
codegen_flags: <defaults>
</compile_context>

<pallas_src>
import functools

import jax
import jax.numpy as jnp
from jax.experimental import pallas as pl
from jax.experimental.pallas import tpu as pltpu

HIDDEN = 256
TILE_B = 2048  # multiple of 8; few-MiB working set on v5e/v6e/v7x


def _round_up(x, m):
    return ((x + m - 1) // m) * m


def prenet_kernel(x_ref, w1_ref, b1_ref, w2_ref, b2_ref, o_ref):
    """Fused two-layer MLP: relu(x @ W1 + b1) -> relu(h @ W2 + b2)."""
    # fc1: cast the native-dtype tile to bf16 in-register, f32 accumulation.
    x = x_ref[...].astype(jnp.bfloat16)
    h = jnp.dot(x, w1_ref[...], preferred_element_type=jnp.float32)
    h = jnp.maximum(h + b1_ref[...], 0.0)
    # fc2 (bf16 operands, f32 accumulation) + relu; store as bf16.
    y = jnp.dot(h.astype(jnp.bfloat16), w2_ref[...],
                preferred_element_type=jnp.float32)
    o_ref[...] = jnp.maximum(y + b2_ref[...], 0.0).astype(o_ref.dtype)


def _pick_tile(B, tile_b):
    """Batch tile: multiple of 8 (or full B when B < 8), >=2 grid steps for big B."""
    if B < 8:
        return B
    eff = min(tile_b, (B // 8) * 8)
    if B > 512:  # make sure both v7x TensorCores get at least one step
        eff = min(eff, _round_up(-(-B // 2), 8))
    return max(eff, 8)


@functools.partial(jax.jit, static_argnames=("tile_b",))
def prenet_forward(x, w1, b1, w2, b2, *, tile_b=TILE_B):
    """x: (B, K); w1: (K, 256); b1: (256,)/(1,256); w2: (256, 256); b2: (256,)/(1,256)."""
    B, K = x.shape
    H = w2.shape[1]

    # Param dtype/shape normalization (no-ops if prepare_prenet_params was used).
    w1 = w1.astype(jnp.bfloat16)
    w2 = w2.astype(jnp.bfloat16)
    b1 = b1.reshape(1, H).astype(jnp.float32)
    b2 = b2.reshape(1, H).astype(jnp.float32)

    eff_tile = _pick_tile(B, tile_b)
    grid = (pl.cdiv(B, eff_tile),)

    bytes_in = x.size * x.dtype.itemsize + w1.size * 2 + w2.size * 2 + 2 * H * 4
    bytes_out = B * H * 2
    cost = pl.CostEstimate(
        flops=2 * B * (K * H + H * H),
        transcendentals=0,
        bytes_accessed=bytes_in + bytes_out,
    )

    return pl.pallas_call(
        prenet_kernel,
        out_shape=jax.ShapeDtypeStruct((B, H), jnp.bfloat16),
        grid_spec=pl.GridSpec(
            grid=grid,
            in_specs=[
                pl.BlockSpec((eff_tile, K), lambda i: (i, 0)),  # x tile (native K)
                pl.BlockSpec((K, H), lambda i: (0, 0)),         # w1 (pinned)
                pl.BlockSpec((1, H), lambda i: (0, 0)),         # b1 (pinned)
                pl.BlockSpec((H, H), lambda i: (0, 0)),         # w2 (pinned)
                pl.BlockSpec((1, H), lambda i: (0, 0)),         # b2 (pinned)
            ],
            out_specs=pl.BlockSpec((eff_tile, H), lambda i: (i, 0)),
        ),
        compiler_params=pltpu.CompilerParams(
            dimension_semantics=("parallel",),
            vmem_limit_bytes=32 * 1024 * 1024,
        ),
        cost_estimate=cost,
    )(x, w1, b1, w2, b2)


def prepare_prenet_params(w1, b1, w2, b2):
    """One-time cast: bf16 weights, f32 (1, H) biases (kept persistent)."""
    H = w2.shape[1]
    return (w1.astype(jnp.bfloat16), b1.reshape(1, H).astype(jnp.float32),
            w2.astype(jnp.bfloat16), b2.reshape(1, H).astype(jnp.float32))


def init_prenet_params(key, in_features, hidden=HIDDEN):
    """Deterministic init mirroring nn.Linear defaults (uniform +-1/sqrt(fan_in))."""
    k1, k2, k3, k4 = jax.random.split(key, 4)
    bound1 = 1.0 / jnp.sqrt(in_features)
    bound2 = 1.0 / jnp.sqrt(hidden)
    # Stored as (in, out) = transpose of PyTorch's (out, in) weight layout.
    w1 = jax.random.uniform(k1, (in_features, hidden), jnp.float32, -bound1, bound1)
    b1 = jax.random.uniform(k2, (hidden,), jnp.float32, -bound1, bound1)
    w2 = jax.random.uniform(k3, (hidden, hidden), jnp.float32, -bound2, bound2)
    b2 = jax.random.uniform(k4, (hidden,), jnp.float32, -bound2, bound2)
    return w1, b1, w2, b2


if __name__ == "__main__":
    # Small shapes consistent with the module: n_mels=4, n_frames=8 -> in=32.
    batch, n_mels, n_frames = 2, 4, 8
    in_features = n_mels * n_frames

    key = jax.random.PRNGKey(0)
    k_x, k_p = jax.random.split(key)

    melspec = jax.random.normal(k_x, (batch, in_features), jnp.float32)
    w1, b1, w2, b2 = init_prenet_params(k_p, in_features)
    w1b, b1f, w2b, b2f = prepare_prenet_params(w1, b1, w2, b2)  # persistent params

    out = prenet_forward(melspec, w1b, b1f, w2b, b2f)
    jax.block_until_ready(out)
    assert out.shape == (batch, HIDDEN)
    assert out.dtype == jnp.bfloat16

    # Reference forward pass with matching bf16 rounding / f32 accumulation.
    xb = melspec.astype(jnp.bfloat16).astype(jnp.float32)
    w1f = w1b.astype(jnp.float32)
    w2f = w2b.astype(jnp.float32)
    h_ref = jnp.maximum(xb @ w1f + b1f, 0.0)
    h_ref = h_ref.astype(jnp.bfloat16).astype(jnp.float32)
    ref = jnp.maximum(h_ref @ w2f + b2f, 0.0)
    assert jnp.allclose(out.astype(jnp.float32), ref, atol=3e-2, rtol=3e-2)

    print("KERNEL_OK")
</pallas_src>

<mosaic_0001>
module attributes {stable_mosaic.version = 11 : i64} {
  func.func @prenet_kernel(%arg0: i32, %arg1: memref<2x32xf32, #tpu.memory_space<vmem>>, %arg2: memref<32x256xbf16, #tpu.memory_space<vmem>>, %arg3: memref<1x256xf32, #tpu.memory_space<vmem>>, %arg4: memref<256x256xbf16, #tpu.memory_space<vmem>>, %arg5: memref<1x256xf32, #tpu.memory_space<vmem>>, %arg6: memref<2x256xbf16, #tpu.memory_space<vmem>>) attributes {dimension_semantics = [#tpu.dimension_semantics<parallel>], iteration_bounds = array<i64: 1>, scalar_prefetch = 0 : i64, scratch_operands = 0 : i64, tpu.core_type = #tpu.core_type<tc>, window_params = [{transform_indices = @transform_0, window_bounds = array<i64: 2, 32>}, {pipeline_mode = #tpu.pipeline_mode<synchronous>, transform_indices = @transform_1, window_bounds = array<i64: 32, 256>}, {pipeline_mode = #tpu.pipeline_mode<synchronous>, transform_indices = @transform_2, window_bounds = array<i64: 1, 256>}, {pipeline_mode = #tpu.pipeline_mode<synchronous>, transform_indices = @transform_3, window_bounds = array<i64: 256, 256>}, {pipeline_mode = #tpu.pipeline_mode<synchronous>, transform_indices = @transform_4, window_bounds = array<i64: 1, 256>}, {transform_indices = @transform_5, window_bounds = array<i64: 2, 256>}]} {
    %c0 = arith.constant 0 : index
    %c0_0 = arith.constant 0 : index
    %0 = vector.load %arg1[%c0, %c0_0] : memref<2x32xf32, #tpu.memory_space<vmem>>, vector<2x32xf32>
    %1 = arith.truncf %0 : vector<2x32xf32> to vector<2x32xbf16>
    %c0_1 = arith.constant 0 : index
    %c0_2 = arith.constant 0 : index
    %2 = vector.load %arg2[%c0_1, %c0_2] : memref<32x256xbf16, #tpu.memory_space<vmem>>, vector<32x256xbf16>
    %cst = arith.constant dense<0.000000e+00> : vector<2x256xf32>
    %3 = tpu.matmul %1, %2, %cst {dimension_numbers = #tpu.dot_dimension_numbers<[1], [0], [0], [1], [0, 0, 1, 1], [], []>} : vector<2x32xbf16>, vector<32x256xbf16>, vector<2x256xf32> -> vector<2x256xf32>
    %c0_3 = arith.constant 0 : index
    %c0_4 = arith.constant 0 : index
    %4 = vector.load %arg3[%c0_3, %c0_4] : memref<1x256xf32, #tpu.memory_space<vmem>>, vector<1x256xf32>
    %5 = vector.broadcast %4 : vector<1x256xf32> to vector<2x256xf32>
    %6 = arith.addf %3, %5 : vector<2x256xf32>
    %cst_5 = arith.constant 0.000000e+00 : f32
    %7 = vector.broadcast %cst_5 : f32 to vector<2x256xf32>
    %8 = arith.maximumf %6, %7 : vector<2x256xf32>
    %9 = arith.truncf %8 : vector<2x256xf32> to vector<2x256xbf16>
    %c0_6 = arith.constant 0 : index
    %c0_7 = arith.constant 0 : index
    %10 = vector.load %arg4[%c0_6, %c0_7] : memref<256x256xbf16, #tpu.memory_space<vmem>>, vector<256x256xbf16>
    %cst_8 = arith.constant dense<0.000000e+00> : vector<2x256xf32>
    %11 = tpu.matmul %9, %10, %cst_8 {dimension_numbers = #tpu.dot_dimension_numbers<[1], [0], [0], [1], [0, 0, 1, 1], [], []>} : vector<2x256xbf16>, vector<256x256xbf16>, vector<2x256xf32> -> vector<2x256xf32>
    %c0_9 = arith.constant 0 : index
    %c0_10 = arith.constant 0 : index
    %12 = vector.load %arg5[%c0_9, %c0_10] : memref<1x256xf32, #tpu.memory_space<vmem>>, vector<1x256xf32>
    %13 = vector.broadcast %12 : vector<1x256xf32> to vector<2x256xf32>
    %14 = arith.addf %11, %13 : vector<2x256xf32>
    %cst_11 = arith.constant 0.000000e+00 : f32
    %15 = vector.broadcast %cst_11 : f32 to vector<2x256xf32>
    %16 = arith.maximumf %14, %15 : vector<2x256xf32>
    %17 = arith.truncf %16 : vector<2x256xf32> to vector<2x256xbf16>
    %c0_12 = arith.constant 0 : index
    %c0_13 = arith.constant 0 : index
    %18 = vector.load %arg6[%c0_12, %c0_13] : memref<2x256xbf16, #tpu.memory_space<vmem>>, vector<2x256xbf16>
    tpu.vector_store %arg6[%c0_12, %c0_13], %17 {strides = array<i32>} : memref<2x256xbf16, #tpu.memory_space<vmem>>, vector<2x256xbf16>,
    return
  }
  func.func @transform_0(%arg0: i32) -> (i32, i32) {
    %c0_i32 = arith.constant 0 : i32
    %c0_i32_0 = arith.constant 0 : i32
    return %arg0, %c0_i32 : i32, i32
  }
  func.func @transform_1(%arg0: i32) -> (i32, i32) {
    %c0_i32 = arith.constant 0 : i32
    %c0_i32_0 = arith.constant 0 : i32
    %c0_i32_1 = arith.constant 0 : i32
    return %c0_i32, %c0_i32_0 : i32, i32
  }
  func.func @transform_2(%arg0: i32) -> (i32, i32) {
    %c0_i32 = arith.constant 0 : i32
    %c0_i32_0 = arith.constant 0 : i32
    %c0_i32_1 = arith.constant 0 : i32
    return %c0_i32, %c0_i32_0 : i32, i32
  }
  func.func @transform_3(%arg0: i32) -> (i32, i32) {
    %c0_i32 = arith.constant 0 : i32
    %c0_i32_0 = arith.constant 0 : i32
    %c0_i32_1 = arith.constant 0 : i32
    return %c0_i32, %c0_i32_0 : i32, i32
  }
  func.func @transform_4(%arg0: i32) -> (i32, i32) {
    %c0_i32 = arith.constant 0 : i32
    %c0_i32_0 = arith.constant 0 : i32
    %c0_i32_1 = arith.constant 0 : i32
    return %c0_i32, %c0_i32_0 : i32, i32
  }
  func.func @transform_5(%arg0: i32) -> (i32, i32) {
    %c0_i32 = arith.constant 0 : i32
    %c0_i32_0 = arith.constant 0 : i32
    return %arg0, %c0_i32 : i32, i32
  }
}

</mosaic_0001>

<bundles_post_ra>
// kernel: prenet_forward.1
= control target key start
LH: loop header
LB: loop body
LE: loop exit
PB: predicated region body
PF: predicated region fallthrough
CT: control target
= control target key end

     0   :  { %10 = vsyncpa [#allocation3], 0  ;;  %s725_s0 = inlined_call_operand.hbm [shape: f32[2,32], index: 0, kind: input, shape index: {}]   ;;  %s726_s1 = inlined_call_operand.hbm [shape: bf16[32,256], index: 1, kind: input, shape index: {}]   ;;  %s727_s2 = inlined_call_operand.vmem [shape: f32[1,256], index: 2, kind: input, shape index: {}]   ;;  %s728_s3 = inlined_call_operand.hbm [shape: bf16[256,256], index: 3, kind: input, shape index: {}]   ;;  %s729_s4 = inlined_call_operand.vmem [shape: f32[1,256], index: 4, kind: input, shape index: {}]   ;;  %s730_s5 = inlined_call_operand.hbm [shape: bf16[2,256], index: 5, kind: output, shape index: {}]  }
   0x1   :  { %11 = vsyncpa [#allocation6], 0 }
   0x2   :  { %12 = vsyncpa [#allocation4], 0  ;;  %s627_s18 = smov [#allocation5]   ;;  %s533_s22 = scalar_lea.hbm %s726_s1, 512 }
   0x3   :  { %s28_s19 = sshll.u32 %s627_s18, 4  ;;  %p534_p0 = scmp.ne.s32.totalorder %s726_s1, %s533_s22  ;;  %s29_s19 = int_to_ptr.vmem [resolvable:$true] %s28_s19 }
   0x4   :  { %p537_p1 = scmp.lt.u32.totalorder %s533_s22, %s726_s1 }
   0x6   :  { %p539_p2 = pnand %p537_p1, %p534_p0 }
   0x8   :  { %542 = shalt.err (!%p539_p2)
}
   0x9   :  { %s543_s27 = scalar_lea.vmem %s29_s19, 512  ;;  %p548_p4 = scmp.lt.s32.totalorder %s29_s19, %s29_s19 }
   0xa   :  { %p544_p3 = scmp.ne.s32.totalorder %s29_s19, %s543_s27  ;;  %p549_p5 = scmp.lt.s32.totalorder %s543_s27, %s543_s27 }
   0xc   :  { %p550_p6 = por %p549_p5, %p548_p4 }
   0xe   :  { %p551_p7 = pnand %p550_p6, %p544_p3 }
  0x10   :  { %554 = shalt.err (!%p551_p7)
}
  0x11   :  { %s628_s28 = smov 128   ;;  %s629_s29 = smov 8  }
  0x12   :  { %34 = dma.hbm_to_vmem [thread:$0]  %s726_s1, 512, %s29_s19, [#allocation6], %s628_s28, %s628_s28, %s629_s29  }
  0x13   :  { %s630_s7 = smov [#allocation2]   ;;  %s631_s9 = smov [#allocation7]  }
  0x14   :  { %s19_s8 = sshll.u32 %s630_s7, 4  ;;  %s42_s10 = sshll.u32 %s631_s9, 4  ;;  %s20_s8 = int_to_ptr.vmem [resolvable:$true] %s19_s8  ;;  %s43_s10 = int_to_ptr.vmem [resolvable:$true] %s42_s10 }
  0x15   :  { %s555_s13 = scalar_lea.hbm %s725_s0, 32 }
  0x16   :  { %p556_p8 = scmp.ne.s32.totalorder %s725_s0, %s555_s13  ;;  %p559_p9 = scmp.lt.u32.totalorder %s555_s13, %s725_s0 }
  0x18   :  { %p561_p10 = pnand %p559_p9, %p556_p8 }
  0x1a   :  { %564 = shalt.err (!%p561_p10)
}
  0x1b   :  { %s565_s1 = scalar_lea.vmem %s20_s8, 32  ;;  %p570_p12 = scmp.lt.s32.totalorder %s20_s8, %s20_s8 }
  0x1c   :  { %p566_p11 = scmp.ne.s32.totalorder %s20_s8, %s565_s1  ;;  %p571_p13 = scmp.lt.s32.totalorder %s565_s1, %s565_s1 }
  0x1e   :  { %p572_p0 = por %p571_p13, %p570_p12 }
  0x20   :  { %p573_p1 = pnand %p572_p0, %p566_p11 }
  0x22   :  { %576 = shalt.err (!%p573_p1)
}
  0x23   :  { %22 = dma.hbm_to_vmem [thread:$0]  %s725_s0, 32, %s20_s8, [#allocation3]  }
  0x24   :  { %s577_s22 = scalar_lea.hbm %s728_s3, 4096 }
  0x25   :  { %p578_p2 = scmp.ne.s32.totalorder %s728_s3, %s577_s22  ;;  %p581_p3 = scmp.lt.u32.totalorder %s577_s22, %s728_s3 }
  0x27   :  { %p583_p4 = pnand %p581_p3, %p578_p2 }
  0x29   :  { %586 = shalt.err (!%p583_p4)
}
  0x2a   :  { %s587_s27 = scalar_lea.vmem %s43_s10, 4096  ;;  %p592_p6 = scmp.lt.s32.totalorder %s43_s10, %s43_s10 }
  0x2b   :  { %p588_p5 = scmp.ne.s32.totalorder %s43_s10, %s587_s27  ;;  %p593_p7 = scmp.lt.s32.totalorder %s587_s27, %s587_s27 }
  0x2d   :  { %p594_p8 = por %p593_p7, %p592_p6 }
  0x2f   :  { %p595_p9 = pnand %p594_p8, %p588_p5 }
  0x31   :  { %598 = shalt.err (!%p595_p9)
}
  0x32   :  { %48 = dma.hbm_to_vmem [thread:$0]  %s728_s3, 4096, %s43_s10, [#allocation6], %s628_s28, %s628_s28, %s629_s29  }
  0x33   :  { %621 = dma.done.wait [#allocation3], 32  }
  0x34   :  { %622 = vsyncadd [#allocation3], 4294967264 }
  0x35   :  { %623 = dma.done.wait [#allocation6], 4608  }
  0x36   :  { %624 = vsyncadd [#allocation6], 4294962688  ;;  %v632_v0 = vmov 0   ;;  %v479_v1 = vld [vmem:[#allocation5 + $0x4] ss:$8 sps:$4 sm:$0xff]   ;;  %vm99_vm0 = vcmask 261120   ;;  %v69_v39 = vlaneseq }
  0x37   :  { %135 = vmatprep.mubr.bf16.mxu0 %v632_v0  ;;  %v481_v2 = vld [vmem:[#allocation5] ss:$8 sps:$4 sm:$0xff]   ;;  %103 = vmatprep.subr.bf16.mxu0 %v479_v1  ;;  %v482_v3 = vld [vmem:[#allocation5 + $0x14] ss:$8 sps:$4 sm:$0xff]   ;;  %v484_v4 = vld [vmem:[#allocation5 + $0x10] ss:$8 sps:$4 sm:$0xff]  }
  0x38   :  { %v61_v5 = vld [vmem:[#allocation2] sm:$0x3]  ;;  %104 = vmatpush1.bf16.msra.mxu0 %v481_v2  ;;  %v485_v6 = vld [vmem:[#allocation7 + $0x4] ss:$8 sps:$4 sm:$0xff]   ;;  %v487_v7 = vld [vmem:[#allocation7] ss:$8 sps:$4 sm:$0xff]  }
  0x39   :  { %105 = vmatprep.subr.bf16.mxu0 %v482_v3  ;;  %352 = vmatprep.subr.bf16.mxu1 %v485_v6  ;;  %v488_v8 = vld [vmem:[#allocation7 + $0x14] ss:$8 sps:$4 sm:$0xff]   ;;  %v62_v9 = vpack.c.bf16 %v61_v5, %v61_v5  ;;  %v490_v10 = vld [vmem:[#allocation7 + $0x10] ss:$8 sps:$4 sm:$0xff]   ;;  %v491_v11 = vld [vmem:[#allocation7 + $0x24] ss:$8 sps:$4 sm:$0xff]  }
  0x3a   :  { %353 = vmatpush1.bf16.msra.mxu1 %v487_v7  ;;  %v493_v12 = vld [vmem:[#allocation7 + $0x20] ss:$8 sps:$4 sm:$0xff]   ;;  %v494_v13 = vld [vmem:[#allocation7 + $0x34] ss:$8 sps:$4 sm:$0xff]   ;;  %v496_v14 = vld [vmem:[#allocation7 + $0x30] ss:$8 sps:$4 sm:$0xff]  }
  0x3b   :  { %354 = vmatprep.subr.bf16.mxu1 %v488_v8  ;;  %v497_v15 = vld [vmem:[#allocation7 + $0x44] ss:$8 sps:$4 sm:$0xff]   ;;  %v499_v16 = vld [vmem:[#allocation7 + $0x40] ss:$8 sps:$4 sm:$0xff]   ;;  %v500_v17 = vld [vmem:[#allocation7 + $0x54] ss:$8 sps:$4 sm:$0xff]  }
  0x3c   :  { %106 = vmatpush1.bf16.msra.mxu0 %v484_v4  ;;  %v502_v18 = vld [vmem:[#allocation7 + $0x50] ss:$8 sps:$4 sm:$0xff]   ;;  %v503_v19 = vld [vmem:[#allocation7 + $0x64] ss:$8 sps:$4 sm:$0xff]   ;;  %v505_v20 = vld [vmem:[#allocation7 + $0x60] ss:$8 sps:$4 sm:$0xff]  }
  0x3d   :  { %v506_v21 = vld [vmem:[#allocation7 + $0x74] ss:$8 sps:$4 sm:$0xff]   ;;  %v508_v22 = vld [vmem:[#allocation7 + $0x70] ss:$8 sps:$4 sm:$0xff]   ;;  %v509_v23 = vld [vmem:[#allocation7 + $0x84] ss:$8 sps:$4 sm:$0xff]  }
  0x3e   :  { %355 = vmatpush1.bf16.msra.mxu1 %v490_v10  ;;  %v511_v24 = vld [vmem:[#allocation7 + $0x80] ss:$8 sps:$4 sm:$0xff]   ;;  %v512_v25 = vld [vmem:[#allocation7 + $0x94] ss:$8 sps:$4 sm:$0xff]   ;;  %v514_v26 = vld [vmem:[#allocation7 + $0x90] ss:$8 sps:$4 sm:$0xff]  }
  0x3f   :  { %436 = vmatmul.mubr.msk.bf16.vlgmr.msra.gmra.mrb[0].mxu0 %vm99_vm0, %v62_v9  ;;  %356 = vmatprep.subr.bf16.mxu1 %v491_v11  ;;  %v515_v27 = vld [vmem:[#allocation7 + $0xa4] ss:$8 sps:$4 sm:$0xff]   ;;  %v517_v28 = vld [vmem:[#allocation7 + $0xa0] ss:$8 sps:$4 sm:$0xff]   ;;  %v518_v29 = vld [vmem:[#allocation7 + $0xb4] ss:$8 sps:$4 sm:$0xff]  }
  0x40   :  { %v520_v30 = vld [vmem:[#allocation7 + $0xb0] ss:$8 sps:$4 sm:$0xff]   ;;  %v521_v31 = vld [vmem:[#allocation7 + $0xc4] ss:$8 sps:$4 sm:$0xff]   ;;  %v523_v32 = vld [vmem:[#allocation7 + $0xc0] ss:$8 sps:$4 sm:$0xff]  }
  0x41   :  { %v524_v33 = vld [vmem:[#allocation7 + $0xd4] ss:$8 sps:$4 sm:$0xff]   ;;  %v526_v34 = vld [vmem:[#allocation7 + $0xd0] ss:$8 sps:$4 sm:$0xff]   ;;  %v527_v35 = vld [vmem:[#allocation7 + $0xe4] ss:$8 sps:$4 sm:$0xff]  }
  0x42   :  { %357 = vmatpush1.bf16.msra.mxu1 %v493_v12  ;;  %v529_v36 = vld [vmem:[#allocation7 + $0xe0] ss:$8 sps:$4 sm:$0xff]   ;;  %v530_v37 = vld [vmem:[#allocation7 + $0xf4] ss:$8 sps:$4 sm:$0xff]   ;;  %v532_v38 = vld [vmem:[#allocation7 + $0xf0] ss:$8 sps:$4 sm:$0xff]  }
  0x43   :  { %358 = vmatprep.subr.bf16.mxu1 %v494_v13  ;;  %v70_v40 = vshrl.u32 %v69_v39, 7  ;;  %v67_v42 = vld [vmem:[%s727_s2] sm:$0x3]  ;;  %v633_v57 = vmov 1966171168   ;;  %s634_s2 = smov [#allocation8]  }
  0x44   :  { %v180_v56 = vld [vmem:[%s729_s4] sm:$0x3]  ;;  %v401_v58 = vunpack.c.l.s4 %v633_v57  ;;  %s422_s7 = sshll.u32 %s634_s2, 4  ;;  %s423_s7 = int_to_ptr.vmem [resolvable:$true] %s422_s7 }
  0x45   :  { %v71_v41 = vsub.s32 0, %v70_v40  ;;  %v75_v43 = vsub.s32 1, %v70_v40  ;;  %s599_s4 = scalar_lea.vmem %s423_s7, 32  ;;  %p604_p11 = scmp.lt.s32.totalorder %s423_s7, %s423_s7 }
  0x46   :  { %359 = vmatpush1.bf16.msra.mxu1 %v496_v14  ;;  %v402_v62 = vunpack.c.0.s8 %v401_v58  ;;  %p600_p10 = scmp.ne.s32.totalorder %s423_s7, %s599_s4  ;;  %p605_p12 = scmp.lt.s32.totalorder %s599_s4, %s599_s4 }
  0x47   :  { %360 = vmatprep.subr.bf16.mxu1 %v497_v15  ;;  %v72_v44 = vrot.slane %v67_v42, %v71_v41  ;;  %v76_v45 = vrot.slane %v67_v42, %v75_v43  ;;  %v185_v59 = vrot.slane %v180_v56, %v71_v41  ;;  %v189_v60 = vrot.slane %v180_v56, %v75_v43 }
  0x48   :  { %v405_v6 = vsub.s32 %v402_v62, %v70_v40  ;;  %p606_p13 = por %p605_p12, %p604_p11 }
  0x4a   :  { %361 = vmatpush1.bf16.msra.mxu1 %v499_v16  ;;  %p607_p0 = pnand %p606_p13, %p600_p10 }
  0x4b   :  { %362 = vmatprep.subr.bf16.mxu1 %v500_v17 }
  0x4e   :  { %363 = vmatpush1.bf16.msra.mxu1 %v502_v18 }
  0x4f   :  { %364 = vmatprep.subr.bf16.mxu1 %v503_v19 }
  0x52   :  { %365 = vmatpush1.bf16.msra.mxu1 %v505_v20 }
  0x53   :  { %366 = vmatprep.subr.bf16.mxu1 %v506_v21 }
  0x56   :  { %367 = vmatpush1.bf16.msra.mxu1 %v508_v22 }
  0x57   :  { %368 = vmatprep.subr.bf16.mxu1 %v509_v23 }
  0x5a   :  { %369 = vmatpush1.bf16.msra.mxu1 %v511_v24 }
  0x5b   :  { %370 = vmatprep.subr.bf16.mxu1 %v512_v25 }
  0x5e   :  { %371 = vmatpush1.bf16.msra.mxu1 %v514_v26 }
  0x5f   :  { %372 = vmatprep.subr.bf16.mxu1 %v515_v27 }
  0x62   :  { %373 = vmatpush1.bf16.msra.mxu1 %v517_v28 }
  0x63   :  { %374 = vmatprep.subr.bf16.mxu1 %v518_v29 }
  0x66   :  { %375 = vmatpush1.bf16.msra.mxu1 %v520_v30 }
  0x67   :  { %376 = vmatprep.subr.bf16.mxu1 %v521_v31 }
  0x6a   :  { %377 = vmatpush1.bf16.msra.mxu1 %v523_v32 }
  0x6b   :  { %378 = vmatprep.subr.bf16.mxu1 %v524_v33 }
  0x6e   :  { %379 = vmatpush1.bf16.msra.mxu1 %v526_v34 }
  0x6f   :  { %380 = vmatprep.subr.bf16.mxu1 %v527_v35 }
  0x72   :  { %381 = vmatpush1.bf16.msra.mxu1 %v529_v36 }
  0x73   :  { %382 = vmatprep.subr.bf16.mxu1 %v530_v37 }
  0x76   :  { %383 = vmatpush1.bf16.msra.mxu1 %v532_v38 }
 0x112   :  { %v137_v46 = vpop.f32.mrb[0].mxu0 }
 0x113   :  { %v138_v47 = vadd.f32 %v137_v46, %v72_v44  ;;  %v139_v48 = vpop.f32.mrb[1].mxu0 }
 0x114   :  { %v140_v49 = vadd.f32 %v139_v48, %v76_v45  ;;  %v141_v50 = vpop.f32.mrb[2].mxu0 }
 0x115   :  { %v144_v51 = vmax.f32 %v138_v47, 0.0  ;;  %v142_v52 = vpop.f32.mrb[3].mxu0 }
 0x116   :  { %v145_v53 = vmax.f32 %v140_v49, 0.0 }
 0x117   :  { %v146_v55 = vpack.c.bf16 %v144_v51, %v144_v51 }
 0x118   :  { %v147_v54 = vpack.c.bf16 %v145_v53, %v145_v53 }
 0x11a   :  { %384 = vmatprep.mubr.bf16.mxu1 %v147_v54 }
 0x11b   :  { %385 = vmatmul.mubr.bf16.vlgmr.msra.gmra.mrb[0].mxu1 %v146_v55 }
 0x1ee   :  { %v386_v61 = vpop.f32.mrb[0].mxu1 }
 0x1ef   :  { %v387_v63 = vadd.f32 %v386_v61, %v185_v59  ;;  %v388_v0 = vpop.f32.mrb[1].mxu1 }
 0x1f0   :  { %v389_v1 = vadd.f32 %v388_v0, %v189_v60  ;;  %v390_v2 = vpop.f32.mrb[2].mxu1 }
 0x1f1   :  { %v393_v3 = vmax.f32 %v387_v63, 0.0  ;;  %v391_v4 = vpop.f32.mrb[3].mxu1 }
 0x1f2   :  { %v394_v5 = vmax.f32 %v389_v1, 0.0 }
 0x1f4   :  { %v469_v7 = vpack.c.bf16 %v394_v5, %v393_v3 }
 0x1f6   :  { %v406_v8 = vrot.slane %v469_v7, %v405_v6 }
 0x1f8   :  { %470 = vst.sshfl [vmem:[#allocation8] sm:$0x5 pattern:$0x73625140] %v406_v8 }
 0x1f9   :  { %610 = shalt.err (!%p607_p0)
}
 0x1fa   :  { %s611_s10 = scalar_lea.hbm %s730_s5, 32 }
 0x1fb   :  { %p612_p1 = scmp.ne.s32.totalorder %s730_s5, %s611_s10  ;;  %p615_p2 = scmp.lt.u32.totalorder %s611_s10, %s730_s5 }
 0x1fd   :  { %p617_p3 = pnand %p615_p2, %p612_p1 }
 0x1ff   :  { %620 = shalt.err (!%p617_p3)
}
 0x200   :  { %425 = dma.vmem_to_hbm [thread:$0]  %s423_s7, 32, %s730_s5, [#allocation4]  }
 0x201   :  { %625 = dma.done.wait [#allocation4], 32  }
 0x202   :  { %626 = vsyncadd [#allocation4], 4294967264 }
 0x203   :  { %429 = vsyncpa [#allocation3], 1 }
 0x204   :  { %430 = vsyncpa [#allocation6], 1 }
 0x205   :  { %431 = vsyncpa [#allocation4], 1 }

</bundles_post_ra>
